<compile_context>
chip_gen: v7x
topology: tpu7x:2x2x1
jax: 0.10.0
libtpu: 0.0.40
codegen_flags: <defaults>
</compile_context>

<pallas_src>
import functools

import numpy as np
import jax
import jax.numpy as jnp
from jax.experimental import pallas as pl
from jax.experimental.pallas import tpu as pltpu


# ----------------------------- Pallas kernel ------------------------------ #

def _fused_branch_kernel(cols8_ref, w_s8_ref, b_s8_ref,
                         sel_ref, w_s16_ref, b_s16_ref,
                         w_bn8_ref, b_bn8_ref, w_bn16_ref, b_bn16_ref,
                         out8_ref, out16_ref, *, kk):
    """Whole Backbone+Bottleneck branch for one batch element.

    cols8_ref : (1, HW8, 8*8*Cin)  bf16   im2col of the stride-8 patchify conv
    sel_ref   : (kk, HW16, HW8)    bf16   0/1 gather matrices (stride-2, pad-1)
    w_s16_ref : (kk, C8, C16)      bf16   3x3 conv weight split per tap
    outputs   : (1, HW8, HIDDEN) and (1, HW16, HIDDEN) f32 (lane-dense, 128)
    """
    # --- stride-8 patchify conv + ReLU (feat8 stays on-chip) ---
    f8 = jnp.dot(cols8_ref[0], w_s8_ref[...],
                 preferred_element_type=jnp.float32)            # (HW8, C8)
    f8 = jnp.maximum(f8 + b_s8_ref[...], 0.0)                   # f32 epilogue
    f8_b = f8.astype(jnp.bfloat16)

    # --- bottleneck_8 : lane-dense HIDDEN-wide store ---
    y8 = jnp.dot(f8_b, w_bn8_ref[...], preferred_element_type=jnp.float32)
    out8_ref[0] = (y8 + b_bn8_ref[...]).astype(out8_ref.dtype)

    # --- 3x3 stride-2 pad-1 conv + ReLU: in-kernel im2col via kk gathers ---
    hw16 = out16_ref.shape[1]
    c16 = b_s16_ref.shape[-1]
    acc = jnp.zeros((hw16, c16), jnp.float32)
    for k in range(kk):                                         # static unroll
        gathered = jnp.dot(sel_ref[k], f8_b,
                           preferred_element_type=jnp.float32)  # (HW16, C8)
        acc = acc + jnp.dot(gathered.astype(jnp.bfloat16), w_s16_ref[k],
                            preferred_element_type=jnp.float32)
    f16 = jnp.maximum(acc + b_s16_ref[...], 0.0)                # (HW16, C16)

    # --- bottleneck_16 : lane-dense HIDDEN-wide store ---
    y16 = jnp.dot(f16.astype(jnp.bfloat16), w_bn16_ref[...],
                  preferred_element_type=jnp.float32)
    out16_ref[0] = (y16 + b_bn16_ref[...]).astype(out16_ref.dtype)


def fused_backbone_bottleneck(cols8, prep):
    """Run the fused branch kernel over the batch. Returns (out8, out16)."""
    B, hw8, kdim = cols8.shape
    kk, hw16, _ = prep["sel"].shape
    hidden = prep["w_bn8"].shape[1]
    kernel = functools.partial(_fused_branch_kernel, kk=kk)
    out8, out16 = pl.pallas_call(
        kernel,
        out_shape=(jax.ShapeDtypeStruct((B, hw8, hidden), jnp.float32),
                   jax.ShapeDtypeStruct((B, hw16, hidden), jnp.float32)),
        grid=(B,),
        in_specs=[
            pl.BlockSpec((1, hw8, kdim), lambda b: (b, 0, 0)),
            pl.BlockSpec(prep["w_s8"].shape, lambda b: (0, 0)),
            pl.BlockSpec(prep["b_s8"].shape, lambda b: (0, 0)),
            pl.BlockSpec(prep["sel"].shape, lambda b: (0, 0, 0)),
            pl.BlockSpec(prep["w_s16"].shape, lambda b: (0, 0, 0)),
            pl.BlockSpec(prep["b_s16"].shape, lambda b: (0, 0)),
            pl.BlockSpec(prep["w_bn8"].shape, lambda b: (0, 0)),
            pl.BlockSpec(prep["b_bn8"].shape, lambda b: (0, 0)),
            pl.BlockSpec(prep["w_bn16"].shape, lambda b: (0, 0)),
            pl.BlockSpec(prep["b_bn16"].shape, lambda b: (0, 0)),
        ],
        out_specs=(pl.BlockSpec((1, hw8, hidden), lambda b: (b, 0, 0)),
                   pl.BlockSpec((1, hw16, hidden), lambda b: (b, 0, 0))),
        compiler_params=pltpu.CompilerParams(
            dimension_semantics=("parallel",)),   # both v7x TCs get a batch
    )(cols8, prep["w_s8"], prep["b_s8"], prep["sel"], prep["w_s16"],
      prep["b_s16"], prep["w_bn8"], prep["b_bn8"], prep["w_bn16"],
      prep["b_bn16"])
    return out8, out16


# ------------------------------- JAX glue ---------------------------------- #

def build_conv_select(h_in, w_in, h_out, w_out, kh, kw, stride, pad):
    """0/1 gather matrices mapping flattened feat8 rows -> im2col rows."""
    sel = np.zeros((kh * kw, h_out * w_out, h_in * w_in), np.float32)
    for ki in range(kh):
        for kj in range(kw):
            k = ki * kw + kj
            for oh in range(h_out):
                for ow in range(w_out):
                    ih = oh * stride - pad + ki
                    iw = ow * stride - pad + kj
                    if 0 <= ih < h_in and 0 <= iw < w_in:
                        sel[k, oh * w_out + ow, ih * w_in + iw] = 1.0
    return jnp.asarray(sel)


def position_embed_vec(row_embed, col_embed):
    """Learned 2D positional embedding flattened to (HW, 1, C)."""
    H, half = row_embed.shape
    W = col_embed.shape[0]
    pos = jnp.concatenate(
        [jnp.broadcast_to(col_embed[None, :, :], (H, W, half)),
         jnp.broadcast_to(row_embed[:, None, :], (H, W, half))], axis=-1)
    return pos.reshape(H * W, 1, 2 * half).astype(jnp.float32)


def prepare_params(params, h8, w8, h16, w16, c8, c16):
    """One-time prep (outside jit hot path): bf16 weights, gather matrices,
    and the static positional-embedding vectors."""
    return {
        "w_s8": params["w_s8"].astype(jnp.bfloat16),
        "b_s8": params["b_s8"].reshape(1, -1).astype(jnp.float32),
        "w_s16": params["w_s16"].reshape(9, c8, c16).astype(jnp.bfloat16),
        "b_s16": params["b_s16"].reshape(1, -1).astype(jnp.float32),
        "w_bn8": params["w_bn8"].astype(jnp.bfloat16),
        "b_bn8": params["b_bn8"].reshape(1, -1).astype(jnp.float32),
        "w_bn16": params["w_bn16"].astype(jnp.bfloat16),
        "b_bn16": params["b_bn16"].reshape(1, -1).astype(jnp.float32),
        "sel": build_conv_select(h8, w8, h16, w16, 3, 3, 2, 1).astype(
            jnp.bfloat16),
        # static across calls -> hoisted out of the per-call hot path
        "pos_vec_8": position_embed_vec(params["row8"], params["col8"]),
        "pos_vec_16": position_embed_vec(params["row16"], params["col16"]),
    }


@jax.jit
def backbone_bottleneck_pe_forward(img, mask, prep):
    # NCHW -> NHWC; non-overlapping 8x8 patchify is a pure reshape/transpose.
    x = jnp.transpose(img, (0, 2, 3, 1)).astype(jnp.bfloat16)
    B, H, W, C = x.shape
    p = 8
    h8, w8 = H // p, W // p
    h16 = (h8 + 2 - 3) // 2 + 1
    w16 = (w8 + 2 - 3) // 2 + 1
    cols8 = x.reshape(B, h8, p, w8, p, C).transpose(0, 1, 3, 2, 4, 5)
    cols8 = cols8.reshape(B, h8 * w8, p * p * C)      # patch layout (kh,kw,C)

    out8, out16 = fused_backbone_bottleneck(cols8, prep)

    # F.interpolate(..., mode='nearest'): src = floor(dst * in / out).
    Hm, Wm = mask.shape[1], mask.shape[2]
    idx_h = (jnp.arange(h16) * Hm) // h16
    idx_w = (jnp.arange(w16) * Wm) // w16
    mask_down = mask[:, idx_h][:, :, idx_w].astype(jnp.bool_)
    mask_vec = mask_down.reshape(B, h16 * w16)

    # NCHW flatten(2).permute(2,0,1) == (B, HW, C) -> (HW, B, C)
    feat_vec_8 = out8.transpose(1, 0, 2)
    feat_vec_16 = out16.transpose(1, 0, 2)
    return (feat_vec_8, mask_vec, feat_vec_16,
            prep["pos_vec_8"], prep["pos_vec_16"])


# -------------------------- pure-JAX reference ----------------------------- #

def _reference_feats(img, params):
    """f32 reference for the conv/bottleneck path (no Pallas)."""
    x = jnp.transpose(img, (0, 2, 3, 1)).astype(jnp.float32)
    B, H, W, C = x.shape
    h8, w8 = H // 8, W // 8
    cols8 = x.reshape(B, h8, 8, w8, 8, C).transpose(0, 1, 3, 2, 4, 5)
    cols8 = cols8.reshape(B, h8 * w8, 8 * 8 * C)
    f8 = jnp.maximum(
        jnp.einsum("bmk,kn->bmn", cols8, params["w_s8"]) + params["b_s8"], 0.0)
    feat8 = f8.reshape(B, h8, w8, -1)
    xp = jnp.pad(feat8, ((0, 0), (1, 1), (1, 1), (0, 0)))
    h16, w16 = h8 // 2, w8 // 2
    cols = []
    for i in range(3):
        for j in range(3):
            cols.append(xp[:, i:i + 2 * h16:2, j:j + 2 * w16:2, :])
    cols16 = jnp.concatenate(cols, -1).reshape(B, h16 * w16, -1)
    f16 = jnp.maximum(
        jnp.einsum("bmk,kn->bmn", cols16, params["w_s16"]) + params["b_s16"],
        0.0)
    out8 = jnp.einsum("bmk,kn->bmn", f8, params["w_bn8"]) + params["b_bn8"]
    out16 = jnp.einsum("bmk,kn->bmn", f16, params["w_bn16"]) + params["b_bn16"]
    return out8.transpose(1, 0, 2), out16.transpose(1, 0, 2)


# --------------------------------- main ------------------------------------ #

if __name__ == "__main__":
    B, C_IN, H_IMG, W_IMG = 2, 3, 64, 64
    C8, C16, HIDDEN = 32, 64, 128
    H8, W8 = H_IMG // 8, W_IMG // 8        # 8 x 8
    H16, W16 = H8 // 2, W8 // 2            # 4 x 4

    key = jax.random.PRNGKey(0)
    keys = jax.random.split(key, 12)

    params = {
        # backbone stride-8 conv: (kh*kw*C_in, C8), patch layout (kh, kw, C)
        "w_s8": 0.02 * jax.random.normal(keys[0], (8 * 8 * C_IN, C8), jnp.float32),
        "b_s8": 0.01 * jax.random.normal(keys[1], (C8,), jnp.float32),
        # backbone 3x3 stride-2 conv: (9*C8, C16)
        "w_s16": 0.02 * jax.random.normal(keys[2], (9 * C8, C16), jnp.float32),
        "b_s16": 0.01 * jax.random.normal(keys[3], (C16,), jnp.float32),
        # bottlenecks (1x1 convs)
        "w_bn8": 0.02 * jax.random.normal(keys[4], (C8, HIDDEN), jnp.float32),
        "b_bn8": 0.01 * jax.random.normal(keys[5], (HIDDEN,), jnp.float32),
        "w_bn16": 0.02 * jax.random.normal(keys[6], (C16, HIDDEN), jnp.float32),
        "b_bn16": 0.01 * jax.random.normal(keys[7], (HIDDEN,), jnp.float32),
        # learned positional embeddings (row/col, each HIDDEN//2 features)
        "row8": jax.random.normal(keys[8], (H8, HIDDEN // 2), jnp.float32),
        "col8": jax.random.normal(keys[9], (W8, HIDDEN // 2), jnp.float32),
        "row16": jax.random.normal(keys[10], (H16, HIDDEN // 2), jnp.float32),
        "col16": jax.random.normal(keys[11], (W16, HIDDEN // 2), jnp.float32),
    }

    img = jax.random.normal(jax.random.PRNGKey(1), (B, C_IN, H_IMG, W_IMG),
                            jnp.float32)
    mask = jax.random.bernoulli(jax.random.PRNGKey(2), 0.3, (B, H_IMG, W_IMG))

    # One-time prep (hoisted out of the jit hot path).
    prep = prepare_params(params, H8, W8, H16, W16, C8, C16)

    outs = backbone_bottleneck_pe_forward(img, mask, prep)
    outs = jax.block_until_ready(outs)

    feat_vec_8, mask_vec, feat_vec_16, pos_vec_8, pos_vec_16 = outs
    assert feat_vec_8.shape == (H8 * W8, B, HIDDEN)
    assert feat_vec_16.shape == (H16 * W16, B, HIDDEN)
    assert mask_vec.shape == (B, H16 * W16) and mask_vec.dtype == jnp.bool_
    assert pos_vec_8.shape == (H8 * W8, 1, HIDDEN)
    assert pos_vec_16.shape == (H16 * W16, 1, HIDDEN)

    # Correctness check vs an f32 pure-JAX reference (bf16 MXU tolerance).
    ref8, ref16 = _reference_feats(img, params)
    err8 = float(jnp.max(jnp.abs(feat_vec_8 - ref8)))
    err16 = float(jnp.max(jnp.abs(feat_vec_16 - ref16)))
    assert err8 < 2e-2 and err16 < 2e-2, (err8, err16)

    print("KERNEL_OK")
</pallas_src>

<mosaic_0001>
module attributes {stable_mosaic.version = 11 : i64} {
  func.func @_fused_branch_kernel(%arg0: i32, %arg1: memref<1x64x192xbf16, #tpu.memory_space<vmem>>, %arg2: memref<192x32xbf16, #tpu.memory_space<vmem>>, %arg3: memref<1x32xf32, #tpu.memory_space<vmem>>, %arg4: memref<9x16x64xbf16, #tpu.memory_space<vmem>>, %arg5: memref<9x32x64xbf16, #tpu.memory_space<vmem>>, %arg6: memref<1x64xf32, #tpu.memory_space<vmem>>, %arg7: memref<32x128xbf16, #tpu.memory_space<vmem>>, %arg8: memref<1x128xf32, #tpu.memory_space<vmem>>, %arg9: memref<64x128xbf16, #tpu.memory_space<vmem>>, %arg10: memref<1x128xf32, #tpu.memory_space<vmem>>, %arg11: memref<1x64x128xf32, #tpu.memory_space<vmem>>, %arg12: memref<1x16x128xf32, #tpu.memory_space<vmem>>) attributes {dimension_semantics = [#tpu.dimension_semantics<parallel>], iteration_bounds = array<i64: 2>, scalar_prefetch = 0 : i64, scratch_operands = 0 : i64, tpu.core_type = #tpu.core_type<tc>, window_params = [{transform_indices = @transform_0, window_bounds = array<i64: 1, 64, 192>}, {pipeline_mode = #tpu.pipeline_mode<synchronous>, transform_indices = @transform_1, window_bounds = array<i64: 192, 32>}, {pipeline_mode = #tpu.pipeline_mode<synchronous>, transform_indices = @transform_2, window_bounds = array<i64: 1, 32>}, {pipeline_mode = #tpu.pipeline_mode<synchronous>, transform_indices = @transform_3, window_bounds = array<i64: 9, 16, 64>}, {pipeline_mode = #tpu.pipeline_mode<synchronous>, transform_indices = @transform_4, window_bounds = array<i64: 9, 32, 64>}, {pipeline_mode = #tpu.pipeline_mode<synchronous>, transform_indices = @transform_5, window_bounds = array<i64: 1, 64>}, {pipeline_mode = #tpu.pipeline_mode<synchronous>, transform_indices = @transform_6, window_bounds = array<i64: 32, 128>}, {pipeline_mode = #tpu.pipeline_mode<synchronous>, transform_indices = @transform_7, window_bounds = array<i64: 1, 128>}, {pipeline_mode = #tpu.pipeline_mode<synchronous>, transform_indices = @transform_8, window_bounds = array<i64: 64, 128>}, {pipeline_mode = #tpu.pipeline_mode<synchronous>, transform_indices = @transform_9, window_bounds = array<i64: 1, 128>}, {transform_indices = @transform_10, window_bounds = array<i64: 1, 64, 128>}, {transform_indices = @transform_11, window_bounds = array<i64: 1, 16, 128>}]} {
    %c0 = arith.constant 0 : index
    %c0_0 = arith.constant 0 : index
    %c0_1 = arith.constant 0 : index
    %0 = vector.load %arg1[%c0, %c0_0, %c0_1] : memref<1x64x192xbf16, #tpu.memory_space<vmem>>, vector<1x64x192xbf16>
    %1 = vector.shape_cast %0 : vector<1x64x192xbf16> to vector<64x192xbf16>
    %c0_2 = arith.constant 0 : index
    %c0_3 = arith.constant 0 : index
    %2 = vector.load %arg2[%c0_2, %c0_3] : memref<192x32xbf16, #tpu.memory_space<vmem>>, vector<192x32xbf16>
    %cst = arith.constant dense<0.000000e+00> : vector<64x32xf32>
    %3 = tpu.matmul %1, %2, %cst {dimension_numbers = #tpu.dot_dimension_numbers<[1], [0], [0], [1], [0, 0, 1, 1], [], []>} : vector<64x192xbf16>, vector<192x32xbf16>, vector<64x32xf32> -> vector<64x32xf32>
    %c0_4 = arith.constant 0 : index
    %c0_5 = arith.constant 0 : index
    %4 = vector.load %arg3[%c0_4, %c0_5] : memref<1x32xf32, #tpu.memory_space<vmem>>, vector<1x32xf32>
    %5 = vector.broadcast %4 : vector<1x32xf32> to vector<64x32xf32>
    %6 = arith.addf %3, %5 : vector<64x32xf32>
    %cst_6 = arith.constant 0.000000e+00 : f32
    %7 = vector.broadcast %cst_6 : f32 to vector<64x32xf32>
    %8 = arith.maximumf %6, %7 : vector<64x32xf32>
    %9 = arith.truncf %8 : vector<64x32xf32> to vector<64x32xbf16>
    %c0_7 = arith.constant 0 : index
    %c0_8 = arith.constant 0 : index
    %10 = vector.load %arg7[%c0_7, %c0_8] : memref<32x128xbf16, #tpu.memory_space<vmem>>, vector<32x128xbf16>
    %cst_9 = arith.constant dense<0.000000e+00> : vector<64x128xf32>
    %11 = tpu.matmul %9, %10, %cst_9 {dimension_numbers = #tpu.dot_dimension_numbers<[1], [0], [0], [1], [0, 0, 1, 1], [], []>} : vector<64x32xbf16>, vector<32x128xbf16>, vector<64x128xf32> -> vector<64x128xf32>
    %c0_10 = arith.constant 0 : index
    %c0_11 = arith.constant 0 : index
    %12 = vector.load %arg8[%c0_10, %c0_11] : memref<1x128xf32, #tpu.memory_space<vmem>>, vector<1x128xf32>
    %13 = vector.broadcast %12 : vector<1x128xf32> to vector<64x128xf32>
    %14 = arith.addf %11, %13 : vector<64x128xf32>
    %c0_12 = arith.constant 0 : index
    %c0_13 = arith.constant 0 : index
    %c0_14 = arith.constant 0 : index
    %15 = vector.load %arg11[%c0_12, %c0_13, %c0_14] : memref<1x64x128xf32, #tpu.memory_space<vmem>>, vector<1x64x128xf32>
    %16 = vector.shape_cast %15 : vector<1x64x128xf32> to vector<64x128xf32>
    %17 = vector.shape_cast %14 : vector<64x128xf32> to vector<1x64x128xf32>
    tpu.vector_store %arg11[%c0_12, %c0_13, %c0_14], %17 {strides = array<i32>} : memref<1x64x128xf32, #tpu.memory_space<vmem>>, vector<1x64x128xf32>,
    %cst_15 = arith.constant 0.000000e+00 : f32
    %18 = vector.broadcast %cst_15 : f32 to vector<16x64xf32>
    %c0_16 = arith.constant 0 : index
    %c0_17 = arith.constant 0 : index
    %c0_18 = arith.constant 0 : index
    %19 = vector.load %arg4[%c0_16, %c0_17, %c0_18] : memref<9x16x64xbf16, #tpu.memory_space<vmem>>, vector<1x16x64xbf16>
    %20 = vector.shape_cast %19 : vector<1x16x64xbf16> to vector<16x64xbf16>
    %cst_19 = arith.constant dense<0.000000e+00> : vector<16x32xf32>
    %21 = tpu.matmul %20, %9, %cst_19 {dimension_numbers = #tpu.dot_dimension_numbers<[1], [0], [0], [1], [0, 0, 1, 1], [], []>} : vector<16x64xbf16>, vector<64x32xbf16>, vector<16x32xf32> -> vector<16x32xf32>
    %22 = arith.truncf %21 : vector<16x32xf32> to vector<16x32xbf16>
    %c0_20 = arith.constant 0 : index
    %c0_21 = arith.constant 0 : index
    %c0_22 = arith.constant 0 : index
    %23 = vector.load %arg5[%c0_20, %c0_21, %c0_22] : memref<9x32x64xbf16, #tpu.memory_space<vmem>>, vector<1x32x64xbf16>
    %24 = vector.shape_cast %23 : vector<1x32x64xbf16> to vector<32x64xbf16>
    %cst_23 = arith.constant dense<0.000000e+00> : vector<16x64xf32>
    %25 = tpu.matmul %22, %24, %cst_23 {dimension_numbers = #tpu.dot_dimension_numbers<[1], [0], [0], [1], [0, 0, 1, 1], [], []>} : vector<16x32xbf16>, vector<32x64xbf16>, vector<16x64xf32> -> vector<16x64xf32>
    %26 = arith.addf %18, %25 : vector<16x64xf32>
    %c1 = arith.constant 1 : index
    %c0_24 = arith.constant 0 : index
    %c0_25 = arith.constant 0 : index
    %27 = vector.load %arg4[%c1, %c0_24, %c0_25] : memref<9x16x64xbf16, #tpu.memory_space<vmem>>, vector<1x16x64xbf16>
    %28 = vector.shape_cast %27 : vector<1x16x64xbf16> to vector<16x64xbf16>
    %cst_26 = arith.constant dense<0.000000e+00> : vector<16x32xf32>
    %29 = tpu.matmul %28, %9, %cst_26 {dimension_numbers = #tpu.dot_dimension_numbers<[1], [0], [0], [1], [0, 0, 1, 1], [], []>} : vector<16x64xbf16>, vector<64x32xbf16>, vector<16x32xf32> -> vector<16x32xf32>
    %30 = arith.truncf %29 : vector<16x32xf32> to vector<16x32xbf16>
    %c1_27 = arith.constant 1 : index
    %c0_28 = arith.constant 0 : index
    %c0_29 = arith.constant 0 : index
    %31 = vector.load %arg5[%c1_27, %c0_28, %c0_29] : memref<9x32x64xbf16, #tpu.memory_space<vmem>>, vector<1x32x64xbf16>
    %32 = vector.shape_cast %31 : vector<1x32x64xbf16> to vector<32x64xbf16>
    %cst_30 = arith.constant dense<0.000000e+00> : vector<16x64xf32>
    %33 = tpu.matmul %30, %32, %cst_30 {dimension_numbers = #tpu.dot_dimension_numbers<[1], [0], [0], [1], [0, 0, 1, 1], [], []>} : vector<16x32xbf16>, vector<32x64xbf16>, vector<16x64xf32> -> vector<16x64xf32>
    %34 = arith.addf %26, %33 : vector<16x64xf32>
    %c2 = arith.constant 2 : index
    %c0_31 = arith.constant 0 : index
    %c0_32 = arith.constant 0 : index
    %35 = vector.load %arg4[%c2, %c0_31, %c0_32] : memref<9x16x64xbf16, #tpu.memory_space<vmem>>, vector<1x16x64xbf16>
    %36 = vector.shape_cast %35 : vector<1x16x64xbf16> to vector<16x64xbf16>
    %cst_33 = arith.constant dense<0.000000e+00> : vector<16x32xf32>
    %37 = tpu.matmul %36, %9, %cst_33 {dimension_numbers = #tpu.dot_dimension_numbers<[1], [0], [0], [1], [0, 0, 1, 1], [], []>} : vector<16x64xbf16>, vector<64x32xbf16>, vector<16x32xf32> -> vector<16x32xf32>
    %38 = arith.truncf %37 : vector<16x32xf32> to vector<16x32xbf16>
    %c2_34 = arith.constant 2 : index
    %c0_35 = arith.constant 0 : index
    %c0_36 = arith.constant 0 : index
    %39 = vector.load %arg5[%c2_34, %c0_35, %c0_36] : memref<9x32x64xbf16, #tpu.memory_space<vmem>>, vector<1x32x64xbf16>
    %40 = vector.shape_cast %39 : vector<1x32x64xbf16> to vector<32x64xbf16>
    %cst_37 = arith.constant dense<0.000000e+00> : vector<16x64xf32>
    %41 = tpu.matmul %38, %40, %cst_37 {dimension_numbers = #tpu.dot_dimension_numbers<[1], [0], [0], [1], [0, 0, 1, 1], [], []>} : vector<16x32xbf16>, vector<32x64xbf16>, vector<16x64xf32> -> vector<16x64xf32>
    %42 = arith.addf %34, %41 : vector<16x64xf32>
    %c3 = arith.constant 3 : index
    %c0_38 = arith.constant 0 : index
    %c0_39 = arith.constant 0 : index
    %43 = vector.load %arg4[%c3, %c0_38, %c0_39] : memref<9x16x64xbf16, #tpu.memory_space<vmem>>, vector<1x16x64xbf16>
    %44 = vector.shape_cast %43 : vector<1x16x64xbf16> to vector<16x64xbf16>
    %cst_40 = arith.constant dense<0.000000e+00> : vector<16x32xf32>
    %45 = tpu.matmul %44, %9, %cst_40 {dimension_numbers = #tpu.dot_dimension_numbers<[1], [0], [0], [1], [0, 0, 1, 1], [], []>} : vector<16x64xbf16>, vector<64x32xbf16>, vector<16x32xf32> -> vector<16x32xf32>
    %46 = arith.truncf %45 : vector<16x32xf32> to vector<16x32xbf16>
    %c3_41 = arith.constant 3 : index
    %c0_42 = arith.constant 0 : index
    %c0_43 = arith.constant 0 : index
    %47 = vector.load %arg5[%c3_41, %c0_42, %c0_43] : memref<9x32x64xbf16, #tpu.memory_space<vmem>>, vector<1x32x64xbf16>
    %48 = vector.shape_cast %47 : vector<1x32x64xbf16> to vector<32x64xbf16>
    %cst_44 = arith.constant dense<0.000000e+00> : vector<16x64xf32>
    %49 = tpu.matmul %46, %48, %cst_44 {dimension_numbers = #tpu.dot_dimension_numbers<[1], [0], [0], [1], [0, 0, 1, 1], [], []>} : vector<16x32xbf16>, vector<32x64xbf16>, vector<16x64xf32> -> vector<16x64xf32>
    %50 = arith.addf %42, %49 : vector<16x64xf32>
    %c4 = arith.constant 4 : index
    %c0_45 = arith.constant 0 : index
    %c0_46 = arith.constant 0 : index
    %51 = vector.load %arg4[%c4, %c0_45, %c0_46] : memref<9x16x64xbf16, #tpu.memory_space<vmem>>, vector<1x16x64xbf16>
    %52 = vector.shape_cast %51 : vector<1x16x64xbf16> to vector<16x64xbf16>
    %cst_47 = arith.constant dense<0.000000e+00> : vector<16x32xf32>
    %53 = tpu.matmul %52, %9, %cst_47 {dimension_numbers = #tpu.dot_dimension_numbers<[1], [0], [0], [1], [0, 0, 1, 1], [], []>} : vector<16x64xbf16>, vector<64x32xbf16>, vector<16x32xf32> -> vector<16x32xf32>
    %54 = arith.truncf %53 : vector<16x32xf32> to vector<16x32xbf16>
    %c4_48 = arith.constant 4 : index
    %c0_49 = arith.constant 0 : index
    %c0_50 = arith.constant 0 : index
    %55 = vector.load %arg5[%c4_48, %c0_49, %c0_50] : memref<9x32x64xbf16, #tpu.memory_space<vmem>>, vector<1x32x64xbf16>
    %56 = vector.shape_cast %55 : vector<1x32x64xbf16> to vector<32x64xbf16>
    %cst_51 = arith.constant dense<0.000000e+00> : vector<16x64xf32>
    %57 = tpu.matmul %54, %56, %cst_51 {dimension_numbers = #tpu.dot_dimension_numbers<[1], [0], [0], [1], [0, 0, 1, 1], [], []>} : vector<16x32xbf16>, vector<32x64xbf16>, vector<16x64xf32> -> vector<16x64xf32>
    %58 = arith.addf %50, %57 : vector<16x64xf32>
    %c5 = arith.constant 5 : index
    %c0_52 = arith.constant 0 : index
    %c0_53 = arith.constant 0 : index
    %59 = vector.load %arg4[%c5, %c0_52, %c0_53] : memref<9x16x64xbf16, #tpu.memory_space<vmem>>, vector<1x16x64xbf16>
    %60 = vector.shape_cast %59 : vector<1x16x64xbf16> to vector<16x64xbf16>
    %cst_54 = arith.constant dense<0.000000e+00> : vector<16x32xf32>
    %61 = tpu.matmul %60, %9, %cst_54 {dimension_numbers = #tpu.dot_dimension_numbers<[1], [0], [0], [1], [0, 0, 1, 1], [], []>} : vector<16x64xbf16>, vector<64x32xbf16>, vector<16x32xf32> -> vector<16x32xf32>
    %62 = arith.truncf %61 : vector<16x32xf32> to vector<16x32xbf16>
    %c5_55 = arith.constant 5 : index
    %c0_56 = arith.constant 0 : index
    %c0_57 = arith.constant 0 : index
    %63 = vector.load %arg5[%c5_55, %c0_56, %c0_57] : memref<9x32x64xbf16, #tpu.memory_space<vmem>>, vector<1x32x64xbf16>
    %64 = vector.shape_cast %63 : vector<1x32x64xbf16> to vector<32x64xbf16>
    %cst_58 = arith.constant dense<0.000000e+00> : vector<16x64xf32>
    %65 = tpu.matmul %62, %64, %cst_58 {dimension_numbers = #tpu.dot_dimension_numbers<[1], [0], [0], [1], [0, 0, 1, 1], [], []>} : vector<16x32xbf16>, vector<32x64xbf16>, vector<16x64xf32> -> vector<16x64xf32>
    %66 = arith.addf %58, %65 : vector<16x64xf32>
    %c6 = arith.constant 6 : index
    %c0_59 = arith.constant 0 : index
    %c0_60 = arith.constant 0 : index
    %67 = vector.load %arg4[%c6, %c0_59, %c0_60] : memref<9x16x64xbf16, #tpu.memory_space<vmem>>, vector<1x16x64xbf16>
    %68 = vector.shape_cast %67 : vector<1x16x64xbf16> to vector<16x64xbf16>
    %cst_61 = arith.constant dense<0.000000e+00> : vector<16x32xf32>
    %69 = tpu.matmul %68, %9, %cst_61 {dimension_numbers = #tpu.dot_dimension_numbers<[1], [0], [0], [1], [0, 0, 1, 1], [], []>} : vector<16x64xbf16>, vector<64x32xbf16>, vector<16x32xf32> -> vector<16x32xf32>
    %70 = arith.truncf %69 : vector<16x32xf32> to vector<16x32xbf16>
    %c6_62 = arith.constant 6 : index
    %c0_63 = arith.constant 0 : index
    %c0_64 = arith.constant 0 : index
    %71 = vector.load %arg5[%c6_62, %c0_63, %c0_64] : memref<9x32x64xbf16, #tpu.memory_space<vmem>>, vector<1x32x64xbf16>
    %72 = vector.shape_cast %71 : vector<1x32x64xbf16> to vector<32x64xbf16>
    %cst_65 = arith.constant dense<0.000000e+00> : vector<16x64xf32>
    %73 = tpu.matmul %70, %72, %cst_65 {dimension_numbers = #tpu.dot_dimension_numbers<[1], [0], [0], [1], [0, 0, 1, 1], [], []>} : vector<16x32xbf16>, vector<32x64xbf16>, vector<16x64xf32> -> vector<16x64xf32>
    %74 = arith.addf %66, %73 : vector<16x64xf32>
    %c7 = arith.constant 7 : index
    %c0_66 = arith.constant 0 : index
    %c0_67 = arith.constant 0 : index
    %75 = vector.load %arg4[%c7, %c0_66, %c0_67] : memref<9x16x64xbf16, #tpu.memory_space<vmem>>, vector<1x16x64xbf16>
    %76 = vector.shape_cast %75 : vector<1x16x64xbf16> to vector<16x64xbf16>
    %cst_68 = arith.constant dense<0.000000e+00> : vector<16x32xf32>
    %77 = tpu.matmul %76, %9, %cst_68 {dimension_numbers = #tpu.dot_dimension_numbers<[1], [0], [0], [1], [0, 0, 1, 1], [], []>} : vector<16x64xbf16>, vector<64x32xbf16>, vector<16x32xf32> -> vector<16x32xf32>
    %78 = arith.truncf %77 : vector<16x32xf32> to vector<16x32xbf16>
    %c7_69 = arith.constant 7 : index
    %c0_70 = arith.constant 0 : index
    %c0_71 = arith.constant 0 : index
    %79 = vector.load %arg5[%c7_69, %c0_70, %c0_71] : memref<9x32x64xbf16, #tpu.memory_space<vmem>>, vector<1x32x64xbf16>
    %80 = vector.shape_cast %79 : vector<1x32x64xbf16> to vector<32x64xbf16>
    %cst_72 = arith.constant dense<0.000000e+00> : vector<16x64xf32>
    %81 = tpu.matmul %78, %80, %cst_72 {dimension_numbers = #tpu.dot_dimension_numbers<[1], [0], [0], [1], [0, 0, 1, 1], [], []>} : vector<16x32xbf16>, vector<32x64xbf16>, vector<16x64xf32> -> vector<16x64xf32>
    %82 = arith.addf %74, %81 : vector<16x64xf32>
    %c8 = arith.constant 8 : index
    %c0_73 = arith.constant 0 : index
    %c0_74 = arith.constant 0 : index
    %83 = vector.load %arg4[%c8, %c0_73, %c0_74] : memref<9x16x64xbf16, #tpu.memory_space<vmem>>, vector<1x16x64xbf16>
    %84 = vector.shape_cast %83 : vector<1x16x64xbf16> to vector<16x64xbf16>
    %cst_75 = arith.constant dense<0.000000e+00> : vector<16x32xf32>
    %85 = tpu.matmul %84, %9, %cst_75 {dimension_numbers = #tpu.dot_dimension_numbers<[1], [0], [0], [1], [0, 0, 1, 1], [], []>} : vector<16x64xbf16>, vector<64x32xbf16>, vector<16x32xf32> -> vector<16x32xf32>
    %86 = arith.truncf %85 : vector<16x32xf32> to vector<16x32xbf16>
    %c8_76 = arith.constant 8 : index
    %c0_77 = arith.constant 0 : index
    %c0_78 = arith.constant 0 : index
    %87 = vector.load %arg5[%c8_76, %c0_77, %c0_78] : memref<9x32x64xbf16, #tpu.memory_space<vmem>>, vector<1x32x64xbf16>
    %88 = vector.shape_cast %87 : vector<1x32x64xbf16> to vector<32x64xbf16>
    %cst_79 = arith.constant dense<0.000000e+00> : vector<16x64xf32>
    %89 = tpu.matmul %86, %88, %cst_79 {dimension_numbers = #tpu.dot_dimension_numbers<[1], [0], [0], [1], [0, 0, 1, 1], [], []>} : vector<16x32xbf16>, vector<32x64xbf16>, vector<16x64xf32> -> vector<16x64xf32>
    %90 = arith.addf %82, %89 : vector<16x64xf32>
    %c0_80 = arith.constant 0 : index
    %c0_81 = arith.constant 0 : index
    %91 = vector.load %arg6[%c0_80, %c0_81] : memref<1x64xf32, #tpu.memory_space<vmem>>, vector<1x64xf32>
    %92 = vector.broadcast %91 : vector<1x64xf32> to vector<16x64xf32>
    %93 = arith.addf %90, %92 : vector<16x64xf32>
    %cst_82 = arith.constant 0.000000e+00 : f32
    %94 = vector.broadcast %cst_82 : f32 to vector<16x64xf32>
    %95 = arith.maximumf %93, %94 : vector<16x64xf32>
    %96 = arith.truncf %95 : vector<16x64xf32> to vector<16x64xbf16>
    %c0_83 = arith.constant 0 : index
    %c0_84 = arith.constant 0 : index
    %97 = vector.load %arg9[%c0_83, %c0_84] : memref<64x128xbf16, #tpu.memory_space<vmem>>, vector<64x128xbf16>
    %cst_85 = arith.constant dense<0.000000e+00> : vector<16x128xf32>
    %98 = tpu.matmul %96, %97, %cst_85 {dimension_numbers = #tpu.dot_dimension_numbers<[1], [0], [0], [1], [0, 0, 1, 1], [], []>} : vector<16x64xbf16>, vector<64x128xbf16>, vector<16x128xf32> -> vector<16x128xf32>
    %c0_86 = arith.constant 0 : index
    %c0_87 = arith.constant 0 : index
    %99 = vector.load %arg10[%c0_86, %c0_87] : memref<1x128xf32, #tpu.memory_space<vmem>>, vector<1x128xf32>
    %100 = vector.broadcast %99 : vector<1x128xf32> to vector<16x128xf32>
    %101 = arith.addf %98, %100 : vector<16x128xf32>
    %c0_88 = arith.constant 0 : index
    %c0_89 = arith.constant 0 : index
    %c0_90 = arith.constant 0 : index
    %102 = vector.load %arg12[%c0_88, %c0_89, %c0_90] : memref<1x16x128xf32, #tpu.memory_space<vmem>>, vector<1x16x128xf32>
    %103 = vector.shape_cast %102 : vector<1x16x128xf32> to vector<16x128xf32>
    %104 = vector.shape_cast %101 : vector<16x128xf32> to vector<1x16x128xf32>
    tpu.vector_store %arg12[%c0_88, %c0_89, %c0_90], %104 {strides = array<i32>} : memref<1x16x128xf32, #tpu.memory_space<vmem>>, vector<1x16x128xf32>,
    return
  }
  func.func @transform_0(%arg0: i32) -> (i32, i32, i32) {
    %c0_i32 = arith.constant 0 : i32
    %c0_i32_0 = arith.constant 0 : i32
    %c0_i32_1 = arith.constant 0 : i32
    return %arg0, %c0_i32, %c0_i32_0 : i32, i32, i32
  }
  func.func @transform_1(%arg0: i32) -> (i32, i32) {
    %c0_i32 = arith.constant 0 : i32
    %c0_i32_0 = arith.constant 0 : i32
    %c0_i32_1 = arith.constant 0 : i32
    return %c0_i32, %c0_i32_0 : i32, i32
  }
  func.func @transform_2(%arg0: i32) -> (i32, i32) {
    %c0_i32 = arith.constant 0 : i32
    %c0_i32_0 = arith.constant 0 : i32
    %c0_i32_1 = arith.constant 0 : i32
    return %c0_i32, %c0_i32_0 : i32, i32
  }
  func.func @transform_3(%arg0: i32) -> (i32, i32, i32) {
    %c0_i32 = arith.constant 0 : i32
    %c0_i32_0 = arith.constant 0 : i32
    %c0_i32_1 = arith.constant 0 : i32
    %c0_i32_2 = arith.constant 0 : i32
    return %c0_i32, %c0_i32_0, %c0_i32_1 : i32, i32, i32
  }
  func.func @transform_4(%arg0: i32) -> (i32, i32, i32) {
    %c0_i32 = arith.constant 0 : i32
    %c0_i32_0 = arith.constant 0 : i32
    %c0_i32_1 = arith.constant 0 : i32
    %c0_i32_2 = arith.constant 0 : i32
    return %c0_i32, %c0_i32_0, %c0_i32_1 : i32, i32, i32
  }
  func.func @transform_5(%arg0: i32) -> (i32, i32) {
    %c0_i32 = arith.constant 0 : i32
    %c0_i32_0 = arith.constant 0 : i32
    %c0_i32_1 = arith.constant 0 : i32
    return %c0_i32, %c0_i32_0 : i32, i32
  }
  func.func @transform_6(%arg0: i32) -> (i32, i32) {
    %c0_i32 = arith.constant 0 : i32
    %c0_i32_0 = arith.constant 0 : i32
    %c0_i32_1 = arith.constant 0 : i32
    return %c0_i32, %c0_i32_0 : i32, i32
  }
  func.func @transform_7(%arg0: i32) -> (i32, i32) {
    %c0_i32 = arith.constant 0 : i32
    %c0_i32_0 = arith.constant 0 : i32
    %c0_i32_1 = arith.constant 0 : i32
    return %c0_i32, %c0_i32_0 : i32, i32
  }
  func.func @transform_8(%arg0: i32) -> (i32, i32) {
    %c0_i32 = arith.constant 0 : i32
    %c0_i32_0 = arith.constant 0 : i32
    %c0_i32_1 = arith.constant 0 : i32
    return %c0_i32, %c0_i32_0 : i32, i32
  }
  func.func @transform_9(%arg0: i32) -> (i32, i32) {
    %c0_i32 = arith.constant 0 : i32
    %c0_i32_0 = arith.constant 0 : i32
    %c0_i32_1 = arith.constant 0 : i32
    return %c0_i32, %c0_i32_0 : i32, i32
  }
  func.func @transform_10(%arg0: i32) -> (i32, i32, i32) {
    %c0_i32 = arith.constant 0 : i32
    %c0_i32_0 = arith.constant 0 : i32
    %c0_i32_1 = arith.constant 0 : i32
    return %arg0, %c0_i32, %c0_i32_0 : i32, i32, i32
  }
  func.func @transform_11(%arg0: i32) -> (i32, i32, i32) {
    %c0_i32 = arith.constant 0 : i32
    %c0_i32_0 = arith.constant 0 : i32
    %c0_i32_1 = arith.constant 0 : i32
    return %arg0, %c0_i32, %c0_i32_0 : i32, i32, i32
  }
}

</mosaic_0001>

<bundles_post_ra>
// kernel: backbone_bottleneck_pe_forward.1
= control target key start
LH: loop header
LB: loop body
LE: loop exit
PB: predicated region body
PF: predicated region fallthrough
CT: control target
= control target key end

     0   :  { %s2544_s17 = smov 0   ;;  %s2900_s0 = inlined_call_operand.vmem [shape: bf16[2,64,192], index: 0, kind: input, shape index: {}]   ;;  %s2901_s1 = inlined_call_operand.vmem [shape: bf16[192,32], index: 1, kind: input, shape index: {}]   ;;  %s2902_s2 = inlined_call_operand.vmem [shape: f32[1,32], index: 2, kind: input, shape index: {}]   ;;  %s2903_s3 = inlined_call_operand.vmem [shape: bf16[9,16,64], index: 3, kind: input, shape index: {}]   ;;  %s2904_s4 = inlined_call_operand.vmem [shape: bf16[9,32,64], index: 4, kind: input, shape index: {}]   ;;  %s2905_s5 = inlined_call_operand.vmem [shape: f32[1,64], index: 5, kind: input, shape index: {}]   ;;  %s2906_s6 = inlined_call_operand.vmem [shape: bf16[32,128], index: 6, kind: input, shape index: {}]   ;;  %s2907_s7 = inlined_call_operand.vmem [shape: f32[1,128], index: 7, kind: input, shape index: {}]   ;;  %s2908_s8 = inlined_call_operand.vmem [shape: bf16[64,128], index: 8, kind: input, shape index: {}]   ;;  %s2909_s9 = inlined_call_operand.vmem [shape: f32[1,128], index: 9, kind: input, shape index: {}]   ;;  %s2910_s10 = inlined_call_operand.vmem [shape: f32[2,64,128], index: 10, kind: output, shape index: {0}]   ;;  %s2911_s11 = inlined_call_operand.vmem [shape: f32[2,16,128], index: 11, kind: output, shape index: {1}]  }
   0x1 LB: > { %s1970_s18 = sadd.s32 4294967295, %s2479_s17   ;;  %p1974_p0 = scmp.ge.s32.totalorder %s2479_s17, 1  ;;  %s2479_s17 = sphi %s2544_s17, %s22_s17  }
   0x2   : > { %p340_p1 = scmp.lt.s32.totalorder %s2479_s17, 3 }
   0x4   : > { %p341_p2 = pnand %p1974_p0, %p340_p1 }
   0x5   : > { %v2416_v0 = vld [vmem:[%s2901_s1] sm:$0xff] (!%p341_p2)   ;;  %v2481_v1 = vmov (!%p341_p2), 0   ;;  %p385_p3 = scmp.lt.s32.totalorder (!%p341_p2), %s1970_s18, 1  ;;  %v2417_v2 = vld [vmem:[%s2901_s1 + $0x8] sm:$0xff] (!%p341_p2)   ;;  %v2418_v3 = vld [vmem:[%s2901_s1 + $0x10] sm:$0xff] (!%p341_p2)   ;;  %vm548_vm0 = vcmask (!%p341_p2), 523264  }
   0x6   : > { %344 = sbr.rel (%p341_p2) target bundleno = 2393 (0x959), region = 60  ;;  %561 = vmatprep.subr.bf16.mxu0 (!%p341_p2), %v2481_v1  ;;  %v2419_v4 = vld [vmem:[%s2901_s1 + $0x18] sm:$0xff] (!%p341_p2)   ;;  %v2420_v6 = vld [vmem:[%s2901_s1 + $0x20] sm:$0xff] (!%p341_p2)   ;;  %v2421_v7 = vld [vmem:[%s2901_s1 + $0x28] sm:$0xff] (!%p341_p2)   ;;  %v2482_v23 = vmov (!%p341_p2), 0.0   ;;  %vm2483_vm1 = vmmov (!%p341_p2), 0  }
   0x7   : > { %562 = vmatpush1.bf16.msra.mxu0 (!%p341_p2), %v2416_v0  ;;  %v2422_v8 = vld [vmem:[%s2901_s1 + $0x30] sm:$0xff] (!%p341_p2)   ;;  %v2423_v9 = vld [vmem:[%s2901_s1 + $0x38] sm:$0xff] (!%p341_p2)   ;;  %v2424_v10 = vld [vmem:[%s2901_s1 + $0x40] sm:$0xff] (!%p341_p2)   ;;  %vm661_vm2 = vcmask (!%p341_p2), 261120  }
   0x8   : > { %563 = vmatprep.subr.bf16.mxu0 (!%p341_p2), %v2481_v1  ;;  %v2425_v11 = vld [vmem:[%s2901_s1 + $0x48] sm:$0xff] (!%p341_p2)   ;;  %v2426_v12 = vld [vmem:[%s2901_s1 + $0x50] sm:$0xff] (!%p341_p2)   ;;  %v2427_v13 = vld [vmem:[%s2901_s1 + $0x58] sm:$0xff] (!%p341_p2)  }
   0x9   : > { %v2440_v21 = vld [vmem:[%s2906_s6] sm:$0xff] (!%p341_p2)   ;;  %v2441_v22 = vld [vmem:[%s2906_s6 + $0x8] sm:$0xff] (!%p341_p2)   ;;  %v2444_v63 = vld [vmem:[%s2904_s4 + $0x10] sm:$0xff] (!%p341_p2)  }
   0xa   : > { %2201 = vmatprep.subr.bf16.mxu1 (!%p341_p2), %v2440_v21  ;;  %v1981_v24 = vld [vmem:[%s2902_s2] ss:$0 sm:$0xff] (!%p341_p2)  ;;  %v2443_v62 = vld [vmem:[%s2903_s3 + $0x8] sm:$0xff] (!%p341_p2)   ;;  %v2445_v0 = vld [vmem:[%s2904_s4 + $0x18] sm:$0xff] (!%p341_p2)  }
   0xb   : > { %564 = vmatpush1.bf16.msra.mxu0 (!%p341_p2), %v2417_v2  ;;  %2202 = vmatpush3.bf16.msra.mxu1 (!%p341_p2), %v2440_v21  ;;  %v2442_v61 = vld [vmem:[%s2903_s3] sm:$0xff] (!%p341_p2)  }
   0xc   : > { %565 = vmatprep.subr.bf16.mxu0 (!%p341_p2), %v2481_v1  ;;  %2203 = vmatprep.subr.bf16.mxu1 (!%p341_p2), %v2441_v22 }
   0xd   : > { %s2913_s18 = smov (!%p385_p3, %s1970_s18), 1 }
   0xe   : > { %s2115_s25 = sshll.u32 %s2913_s18, 6  ;;  %s2117_s21 = sshll.u32 %s2913_s18, 4 }
   0xf   : > { %566 = vmatpush1.bf16.msra.mxu0 %v2418_v3  ;;  %s2572_s30 = scalar_lea.vmem %s2900_s0, %s2115_s25  ;;  %2204 = vmatpush3.bf16.msra.mxu1 %v2441_v22  ;;  %s394_s15 = scalar_lea.vmem %s2910_s10, %s2115_s25 }
  0x10   : > { %567 = vmatprep.subr.bf16.mxu0 %v2481_v1  ;;  %v2430_v5 = vld [vmem:[%s2572_s30 + $0x4] ss:$8 sps:$4 sm:$0xff]   ;;  %v2428_v14 = vld [vmem:[%s2572_s30] ss:$8 sps:$4 sm:$0xff]   ;;  %v2431_v15 = vld [vmem:[%s2572_s30 + $0x14] ss:$8 sps:$4 sm:$0xff]   ;;  %2213 = vmatprep.subr.bf16.mxu1 %v2482_v23  ;;  %s399_s27 = scalar_lea.vmem %s2911_s11, %s2117_s21 }
  0x11   : > { %2002 = vmatprep.mubr.msk.bf16.mxu0 %vm548_vm0, %v2430_v5  ;;  %v2433_v16 = vld [vmem:[%s2572_s30 + $0x10] ss:$8 sps:$4 sm:$0xff]   ;;  %v2434_v17 = vld [vmem:[%s2572_s30 + $0x24] ss:$8 sps:$4 sm:$0xff]   ;;  %v2436_v18 = vld [vmem:[%s2572_s30 + $0x20] ss:$8 sps:$4 sm:$0xff]  }
  0x12   : > { %v2437_v19 = vld [vmem:[%s2572_s30 + $0x34] ss:$8 sps:$4 sm:$0xff]   ;;  %v2439_v20 = vld [vmem:[%s2572_s30 + $0x30] ss:$8 sps:$4 sm:$0xff]  }
  0x13   : > { %568 = vmatpush1.bf16.msra.mxu0 %v2419_v4 }
  0x14   : > { %569 = vmatprep.subr.bf16.mxu0 %v2481_v1 }
  0x17   : > { %570 = vmatpush1.bf16.msra.mxu0 %v2420_v6 }
  0x18   : > { %571 = vmatprep.subr.bf16.mxu0 %v2481_v1 }
  0x1b   : > { %572 = vmatpush1.bf16.msra.mxu0 %v2421_v7 }
  0x1c   : > { %573 = vmatprep.subr.bf16.mxu0 %v2481_v1 }
  0x1f   : > { %574 = vmatpush1.bf16.msra.mxu0 %v2422_v8 }
  0x20   : > { %575 = vmatprep.subr.bf16.mxu0 %v2481_v1 }
  0x23   : > { %576 = vmatpush1.bf16.msra.mxu0 %v2423_v9 }
  0x24   : > { %577 = vmatprep.subr.bf16.mxu0 %v2481_v1 }
  0x27   : > { %578 = vmatpush1.bf16.msra.mxu0 %v2424_v10 }
  0x28   : > { %579 = vmatprep.subr.bf16.mxu0 %v2481_v1 }
  0x2b   : > { %580 = vmatpush1.bf16.msra.mxu0 %v2425_v11 }
  0x2c   : > { %581 = vmatprep.subr.bf16.mxu0 %v2481_v1 }
  0x2f   : > { %582 = vmatpush1.bf16.msra.mxu0 %v2426_v12 }
  0x30   : > { %583 = vmatprep.subr.bf16.mxu0 %v2481_v1  ;;  %v2006_v1 = vld [vmem:[%s2907_s7] ss:$0 sm:$0xff] }
  0x33   : > { %584 = vmatpush1.bf16.msra.mxu0 %v2427_v13 }
  0x34   : > { %2265 = vmatprep.subr.bf16.mxu0 %v2482_v23 }
  0x36   : > { %594 = vmatmul.mubr.bf16.vlgmr.msra.gmra.mrb[0].mxu0 %v2428_v14 }
  0x37   : > { %2003 = vmatprep.mubr.msk.bf16.mxu0 %vm548_vm0, %v2431_v15 }
  0x3e   : > { %602 = vmatmul.mubr.bf16.gmra.mrb[4].mxu0 %v2433_v16 }
  0x3f   : > { %2004 = vmatprep.mubr.msk.bf16.mxu0 %vm548_vm0, %v2434_v17 }
  0x46   : > { %610 = vmatmul.mubr.bf16.gmra.mrb[8].mxu0 %v2436_v18 }
  0x47   : > { %2005 = vmatprep.mubr.msk.bf16.mxu0 %vm548_vm0, %v2437_v19 }
  0x4e   : > { %618 = vmatmul.mubr.bf16.gmra.mrb[12].mxu0 %v2439_v20 }
  0x4f   : > { %2269 = vmatprep.mubr.msk.bf16.mxu0 %vm2483_vm1, %v2482_v23 }
 0x109   : > { %v595_v25 = vpop.f32.mrb[0].mxu0 }
 0x10a   : > { %v596_v26 = vadd.f32 %v1981_v24, %v595_v25  ;;  %v597_v27 = vpop.f32.mrb[1].mxu0 }
 0x10b   : > { %v598_v28 = vpop.f32.mrb[2].mxu0  ;;  %v2446_v27 = vld [vmem:[%s2904_s4] sm:$0xff]  }
 0x10c   : > { %v599_v29 = vadd.f32 %v1981_v24, %v598_v28  ;;  %v600_v30 = vpop.f32.mrb[3].mxu0  ;;  %v626_v31 = vmax.f32 %v596_v26, 0.0 }
 0x10d   : > { %v2447_v30 = vld [vmem:[%s2904_s4 + $0x8] sm:$0xff]  }
 0x10e   : > { %v627_v32 = vmax.f32 %v599_v29, 0.0 }
 0x110   : > { %v2623_v33 = vpack.c.bf16 %v627_v32, %v626_v31  ;;  %v2448_v31 = vld [vmem:[%s2903_s3 + $0x10] sm:$0xff]   ;;  %v2449_v32 = vld [vmem:[%s2903_s3 + $0x18] sm:$0xff]  }
 0x111   : > { %v603_v34 = vpop.f32.mrb[4].mxu0 }
 0x112   : > { %v604_v35 = vadd.f32 %v1981_v24, %v603_v34  ;;  %v605_v36 = vpop.f32.mrb[5].mxu0  ;;  %2205 = vmatprep.mubr.msk.bf16.mxu1 %vm661_vm2, %v2623_v33  ;;  %v2450_v34 = vld [vmem:[%s2904_s4 + $0x20] sm:$0xff]  }
 0x113   : > { %v606_v37 = vpop.f32.mrb[6].mxu0  ;;  %2266 = vmatpush3.bf16.msra.mxu0 %v2450_v34  ;;  %v2461_v34 = vld [vmem:[%s2904_s4 + $0x60] sm:$0xff]  }
 0x114   : > { %v607_v38 = vadd.f32 %v1981_v24, %v606_v37  ;;  %v608_v39 = vpop.f32.mrb[7].mxu0  ;;  %v628_v40 = vmax.f32 %v604_v35, 0.0  ;;  %2267 = vmatprep.subr.bf16.mxu0 %v2482_v23  ;;  %v2451_v35 = vld [vmem:[%s2904_s4 + $0x28] sm:$0xff]  }
 0x116   : > { %v629_v41 = vmax.f32 %v607_v38, 0.0 }
 0x117   : > { %2268 = vmatpush3.bf16.msra.mxu0 %v2451_v35  ;;  %v2462_v35 = vld [vmem:[%s2904_s4 + $0x68] sm:$0xff]  }
 0x118   : > { %v2627_v42 = vpack.c.bf16 %v629_v41, %v628_v40  ;;  %2285 = vmatprep.subr.bf16.mxu0 %v2482_v23 }
 0x119   : > { %v611_v43 = vpop.f32.mrb[8].mxu0 }
 0x11a   : > { %v612_v44 = vadd.f32 %v1981_v24, %v611_v43  ;;  %v613_v45 = vpop.f32.mrb[9].mxu0  ;;  %2206 = vmatmul.mubr.msk.bf16.vlgmr.msra.gmra.mrb[0].mxu1 %vm661_vm2, %v2627_v42 }
 0x11b   : > { %2214 = vmatpush3.bf16.msra.mxu1 %v2623_v33  ;;  %v614_v46 = vpop.f32.mrb[10].mxu0 }
 0x11c   : > { %v615_v47 = vadd.f32 %v1981_v24, %v614_v46  ;;  %v616_v48 = vpop.f32.mrb[11].mxu0  ;;  %2215 = vmatprep.subr.bf16.mxu1 %v2482_v23  ;;  %v630_v49 = vmax.f32 %v612_v44, 0.0 }
 0x11e   : > { %v631_v50 = vmax.f32 %v615_v47, 0.0 }
 0x11f   : > { %2216 = vmatpush3.bf16.msra.mxu1 %v2627_v42 }
 0x120   : > { %v2634_v51 = vpack.c.bf16 %v631_v50, %v630_v49  ;;  %2217 = vmatprep.subr.bf16.mxu1 %v2482_v23  ;;  %v2452_v50 = vld [vmem:[%s2904_s4 + $0x30] sm:$0xff]  }
 0x121   : > { %v619_v52 = vpop.f32.mrb[12].mxu0 }
 0x122   : > { %v620_v53 = vadd.f32 %v1981_v24, %v619_v52  ;;  %v621_v54 = vpop.f32.mrb[13].mxu0  ;;  %2209 = vmatprep.mubr.msk.bf16.mxu1 %vm661_vm2, %v2634_v51 }
 0x123   : > { %2218 = vmatpush3.bf16.msra.mxu1 %v2634_v51  ;;  %v622_v55 = vpop.f32.mrb[14].mxu0  ;;  %v2453_v54 = vld [vmem:[%s2904_s4 + $0x38] sm:$0xff]  }
 0x124   : > { %v623_v56 = vadd.f32 %v1981_v24, %v622_v55  ;;  %v624_v57 = vpop.f32.mrb[15].mxu0  ;;  %2219 = vmatprep.subr.bf16.mxu1 %v2482_v23  ;;  %v632_v58 = vmax.f32 %v620_v53, 0.0 }
 0x126   : > { %v633_v59 = vmax.f32 %v623_v56, 0.0 }
 0x128   : > { %v2641_v60 = vpack.c.bf16 %v633_v59, %v632_v58 }
 0x12a   : > { %2210 = vmatmul.mubr.msk.bf16.gmra.mrb[4].mxu1 %vm661_vm2, %v2641_v60 }
 0x12b   : > { %2220 = vmatpush3.bf16.msra.mxu1 %v2641_v60  ;;  %2221 = vmatprep.mubr.msk.bf16.mxu1 %vm2483_vm1, %v2482_v23 }
 0x12c   : > { %2225 = vmatprep.subr.bf16.mxu1 %v2482_v23 }
 0x132   : > { %2222 = vmatmul.mubr.msk.bf16.vlgmr.msra.gmra.mrb[8].mxu1 %vm548_vm0, %v2442_v61  ;;  %v2454_v61 = vld [vmem:[%s2903_s3 + $0x20] sm:$0xff]  }
 0x133   : > { %2226 = vmatpush3.bf16.msra.mxu1 %v2623_v33  ;;  %2233 = vmatprep.mubr.msk.bf16.mxu1 %vm2483_vm1, %v2482_v23 }
 0x134   : > { %2227 = vmatprep.subr.bf16.mxu1 %v2482_v23 }
 0x137   : > { %2228 = vmatpush3.bf16.msra.mxu1 %v2627_v42 }
 0x138   : > { %2229 = vmatprep.subr.bf16.mxu1 %v2482_v23 }
 0x13b   : > { %2230 = vmatpush3.bf16.msra.mxu1 %v2634_v51 }
 0x13c   : > { %2231 = vmatprep.subr.bf16.mxu1 %v2482_v23 }
 0x13f   : > { %2232 = vmatpush3.bf16.msra.mxu1 %v2641_v60 }
 0x140   : > { %2237 = vmatprep.subr.bf16.mxu1 %v2482_v23 }
 0x142   : > { %2234 = vmatmul.mubr.msk.bf16.vlgmr.msra.gmra.mrb[12].mxu1 %vm548_vm0, %v2443_v62  ;;  %v2455_v62 = vld [vmem:[%s2904_s4 + $0x40] sm:$0xff]  }
 0x143   : > { %2241 = vmatprep.mubr.msk.bf16.mxu1 %vm2483_vm1, %v2482_v23  ;;  %2238 = vmatpush3.bf16.msra.mxu1 %v2444_v63  ;;  %v2456_v63 = vld [vmem:[%s2904_s4 + $0x48] sm:$0xff]  }
 0x144   : > { %2239 = vmatprep.subr.bf16.mxu1 %v2482_v23 }
 0x147   : > { %2240 = vmatpush3.bf16.msra.mxu1 %v2445_v0 }
 0x148   : > { %2245 = vmatprep.subr.bf16.mxu1 %v2482_v23 }
 0x1ed   : > { %v2207_v2 = vpop.f32.mrb[0].mxu1 }
 0x1ee   : > { %v717_v3 = vadd.f32 %v2207_v2, %v2006_v1  ;;  %v708_v4 = vpop.f32.mrb[1].mxu1 }
 0x1ef   : > { %v709_v5 = vadd.f32 %v2006_v1, %v708_v4  ;;  %v2208_v6 = vpop.f32.mrb[2].mxu1 }
 0x1f0   : > { %741 = vst [vmem:[%s394_s15 + $0x10] sm:$0xff] %v717_v3  ;;  %v720_v7 = vadd.f32 %v2208_v6, %v2006_v1  ;;  %v711_v8 = vpop.f32.mrb[3].mxu1 }
 0x1f1   : > { %739 = vst [vmem:[%s394_s15] sm:$0xff] %v709_v5  ;;  %v712_v9 = vadd.f32 %v2006_v1, %v711_v8 }
 0x1f2   : > { %742 = vst [vmem:[%s394_s15 + $0x18] sm:$0xff] %v720_v7 }
 0x1f3   : > { %740 = vst [vmem:[%s394_s15 + $0x8] sm:$0xff] %v712_v9 }
 0x1fd   : > { %v2211_v10 = vpop.f32.mrb[4].mxu1 }
 0x1fe   : > { %v733_v11 = vadd.f32 %v2211_v10, %v2006_v1  ;;  %v724_v12 = vpop.f32.mrb[5].mxu1 }
 0x1ff   : > { %v725_v13 = vadd.f32 %v2006_v1, %v724_v12  ;;  %v2212_v14 = vpop.f32.mrb[6].mxu1 }
 0x200   : > { %745 = vst [vmem:[%s394_s15 + $0x30] sm:$0xff] %v733_v11  ;;  %v736_v15 = vadd.f32 %v2212_v14, %v2006_v1  ;;  %v727_v16 = vpop.f32.mrb[7].mxu1 }
 0x201   : > { %743 = vst [vmem:[%s394_s15 + $0x20] sm:$0xff] %v725_v13  ;;  %v728_v17 = vadd.f32 %v2006_v1, %v727_v16 }
 0x202   : > { %746 = vst [vmem:[%s394_s15 + $0x38] sm:$0xff] %v736_v15 }
 0x203   : > { %744 = vst [vmem:[%s394_s15 + $0x28] sm:$0xff] %v728_v17  ;;  %v2457_v17 = vld [vmem:[%s2903_s3 + $0x28] sm:$0xff]  }
 0x205   : > { %v791_v18 = vpop.f32.mrb[8].mxu1 }
 0x206   : > { %v2223_v19 = vpop.f32.mrb[9].mxu1 }
 0x207   : > { %v794_v20 = vpop.f32.mrb[10].mxu1  ;;  %v2459_v19 = vld [vmem:[%s2904_s4 + $0x58] sm:$0xff]  }
 0x208   : > { %v798_v21 = vpack.c.bf16 %v794_v20, %v791_v18  ;;  %v2224_v22 = vpop.f32.mrb[11].mxu1  ;;  %v2458_v18 = vld [vmem:[%s2904_s4 + $0x50] sm:$0xff]  }
 0x215   : > { %v848_v24 = vpop.f32.mrb[12].mxu1 }
 0x216   : > { %v2235_v25 = vpop.f32.mrb[13].mxu1 }
 0x217   : > { %v851_v26 = vpop.f32.mrb[14].mxu1 }
 0x218   : > { %v855_v28 = vpack.c.bf16 %v851_v26, %v848_v24  ;;  %v2236_v29 = vpop.f32.mrb[15].mxu1 }
 0x21a   : > { %2242 = vmatmul.mubr.msk.bf16.vlgmr.msra.gmra.mrb[16].mxu1 %vm661_vm2, %v855_v28 }
 0x21b   : > { %2246 = vmatpush3.bf16.msra.mxu1 %v2446_v27  ;;  %2249 = vmatprep.mubr.msk.bf16.mxu1 %vm2483_vm1, %v2482_v23 }
 0x21c   : > { %2247 = vmatprep.subr.bf16.mxu1 %v2482_v23 }
 0x21f   : > { %2248 = vmatpush3.bf16.msra.mxu1 %v2447_v30 }
 0x220   : > { %2253 = vmatprep.subr.bf16.mxu1 %v2482_v23 }
 0x222   : > { %2250 = vmatmul.mubr.msk.bf16.vlgmr.msra.gmra.mrb[20].mxu1 %vm661_vm2, %v798_v21 }
 0x223   : > { %2254 = vmatpush3.bf16.msra.mxu1 %v2623_v33  ;;  %2261 = vmatprep.mubr.msk.bf16.mxu1 %vm2483_vm1, %v2482_v23 }
 0x224   : > { %2255 = vmatprep.subr.bf16.mxu1 %v2482_v23 }
 0x227   : > { %2256 = vmatpush3.bf16.msra.mxu1 %v2627_v42 }
 0x228   : > { %2257 = vmatprep.subr.bf16.mxu1 %v2482_v23 }
 0x22b   : > { %2258 = vmatpush3.bf16.msra.mxu1 %v2634_v51 }
 0x22c   : > { %2259 = vmatprep.subr.bf16.mxu1 %v2482_v23 }
 0x22f   : > { %2260 = vmatpush3.bf16.msra.mxu1 %v2641_v60 }
 0x230   : > { %2273 = vmatprep.subr.bf16.mxu1 %v2482_v23 }
 0x232   : > { %2262 = vmatmul.mubr.msk.bf16.vlgmr.msra.gmra.mrb[24].mxu1 %vm548_vm0, %v2448_v31 }
 0x233   : > { %2274 = vmatpush3.bf16.msra.mxu1 %v2623_v33  ;;  %2281 = vmatprep.mubr.msk.bf16.mxu1 %vm2483_vm1, %v2482_v23 }
 0x234   : > { %2275 = vmatprep.subr.bf16.mxu1 %v2482_v23 }
 0x237   : > { %2276 = vmatpush3.bf16.msra.mxu1 %v2627_v42 }
 0x238   : > { %2277 = vmatprep.subr.bf16.mxu1 %v2482_v23 }
 0x23b   : > { %2278 = vmatpush3.bf16.msra.mxu1 %v2634_v51 }
 0x23c   : > { %2279 = vmatprep.subr.bf16.mxu1 %v2482_v23 }
 0x23f   : > { %2280 = vmatpush3.bf16.msra.mxu1 %v2641_v60 }
 0x240   : > { %2305 = vmatprep.subr.bf16.mxu1 %v2482_v23 }
 0x242   : > { %2282 = vmatmul.mubr.msk.bf16.vlgmr.msra.gmra.mrb[28].mxu1 %vm548_vm0, %v2449_v32  ;;  %v2460_v32 = vld [vmem:[%s2903_s3 + $0x30] sm:$0xff]  }
 0x243   : > { %2309 = vmatprep.mubr.msk.bf16.mxu1 %vm2483_vm1, %v2482_v23  ;;  %2306 = vmatpush3.bf16.msra.mxu1 %v2455_v62 }
 0x244   : > { %2307 = vmatprep.subr.bf16.mxu1 %v2482_v23 }
 0x247   : > { %2308 = vmatpush3.bf16.msra.mxu1 %v2456_v63 }
 0x248   : > { %2313 = vmatprep.subr.bf16.mxu1 %v2482_v23 }
 0x2ed   : > { %v910_v36 = vpop.f32.mrb[16].mxu1 }
 0x2ee   : > { %v2243_v37 = vpop.f32.mrb[17].mxu1 }
 0x2ef   : > { %v913_v38 = vpop.f32.mrb[18].mxu1 }
 0x2f0   : > { %v2244_v39 = vpop.f32.mrb[19].mxu1 }
 0x2f5   : > { %v966_v40 = vpop.f32.mrb[20].mxu1 }
 0x2f6   : > { %v967_v41 = vadd.f32 %v966_v40, %v910_v36  ;;  %v2251_v43 = vpop.f32.mrb[21].mxu1 }
 0x2f7   : > { %v969_v44 = vpop.f32.mrb[22].mxu1 }
 0x2f8   : > { %v970_v45 = vadd.f32 %v969_v44, %v913_v38  ;;  %v2252_v46 = vpop.f32.mrb[23].mxu1 }
 0x305   : > { %v1018_v47 = vpop.f32.mrb[24].mxu1 }
 0x306   : > { %v2263_v48 = vpop.f32.mrb[25].mxu1 }
 0x307   : > { %v1021_v49 = vpop.f32.mrb[26].mxu1  ;;  %v2463_v48 = vld [vmem:[%s2903_s3 + $0x38] sm:$0xff]  }
 0x308   : > { %v1025_v52 = vpack.c.bf16 %v1021_v49, %v1018_v47  ;;  %v2264_v53 = vpop.f32.mrb[27].mxu1  ;;  %v2464_v49 = vld [vmem:[%s2904_s4 + $0x70] sm:$0xff]  }
 0x30a   : > { %2270 = vmatmul.mubr.msk.bf16.vlgmr.msra.gmra.mrb[16].mxu0 %vm661_vm2, %v1025_v52 }
 0x30b   : > { %2286 = vmatpush3.bf16.msra.mxu0 %v2452_v50  ;;  %2289 = vmatprep.mubr.msk.bf16.mxu0 %vm2483_vm1, %v2482_v23  ;;  %v2465_v50 = vld [vmem:[%s2904_s4 + $0x78] sm:$0xff]  }
 0x30c   : > { %2287 = vmatprep.subr.bf16.mxu0 %v2482_v23 }
 0x30f   : > { %2288 = vmatpush3.bf16.msra.mxu0 %v2453_v54 }
 0x310   : > { %2293 = vmatprep.subr.bf16.mxu0 %v2482_v23 }
 0x315   : > { %v1134_v55 = vpop.f32.mrb[28].mxu1 }
 0x316   : > { %v2283_v56 = vpop.f32.mrb[29].mxu1 }
 0x317   : > { %v1137_v57 = vpop.f32.mrb[30].mxu1 }
 0x318   : > { %v1141_v58 = vpack.c.bf16 %v1137_v57, %v1134_v55  ;;  %v2284_v59 = vpop.f32.mrb[31].mxu1 }
 0x31a   : > { %2290 = vmatmul.mubr.msk.bf16.vlgmr.msra.gmra.mrb[20].mxu0 %vm661_vm2, %v1141_v58 }
 0x31b   : > { %2294 = vmatpush3.bf16.msra.mxu0 %v2623_v33  ;;  %2301 = vmatprep.mubr.msk.bf16.mxu0 %vm2483_vm1, %v2482_v23 }
 0x31c   : > { %2295 = vmatprep.subr.bf16.mxu0 %v2482_v23 }
 0x31f   : > { %2296 = vmatpush3.bf16.msra.mxu0 %v2627_v42 }
 0x320   : > { %2297 = vmatprep.subr.bf16.mxu0 %v2482_v23 }
 0x323   : > { %2298 = vmatpush3.bf16.msra.mxu0 %v2634_v51 }
 0x324   : > { %2299 = vmatprep.subr.bf16.mxu0 %v2482_v23 }
 0x327   : > { %2300 = vmatpush3.bf16.msra.mxu0 %v2641_v60 }
 0x328   : > { %2325 = vmatprep.subr.bf16.mxu0 %v2482_v23 }
 0x32a   : > { %2302 = vmatmul.mubr.msk.bf16.vlgmr.msra.gmra.mrb[24].mxu0 %vm548_vm0, %v2454_v61 }
 0x32b   : > { %2329 = vmatprep.mubr.msk.bf16.mxu0 %vm2483_vm1, %v2482_v23  ;;  %2326 = vmatpush3.bf16.msra.mxu0 %v2458_v18 }
 0x32c   : > { %2327 = vmatprep.subr.bf16.mxu0 %v2482_v23 }
 0x32f   : > { %2328 = vmatpush3.bf16.msra.mxu0 %v2459_v19 }
 0x330   : > { %2333 = vmatprep.subr.bf16.mxu0 %v2482_v23 }
 0x3dd   : > { %v1080_v0 = vpop.f32.mrb[16].mxu0 }
 0x3de   : > { %v1087_v1 = vadd.f32 %v1080_v0, %v967_v41  ;;  %v2271_v2 = vpop.f32.mrb[17].mxu0  ;;  %v2466_v0 = vld [vmem:[%s2903_s3 + $0x40] sm:$0xff]  }
 0x3df   : > { %v1083_v3 = vpop.f32.mrb[18].mxu0 }
 0x3e0   : > { %v1088_v4 = vadd.f32 %v1083_v3, %v970_v45  ;;  %v2272_v5 = vpop.f32.mrb[19].mxu0 }
 0x3ed   : > { %v1196_v6 = vpop.f32.mrb[20].mxu0 }
 0x3ee   : > { %v1203_v7 = vadd.f32 %v1196_v6, %v1087_v1  ;;  %v2291_v8 = vpop.f32.mrb[21].mxu0 }
 0x3ef   : > { %v1199_v9 = vpop.f32.mrb[22].mxu0  ;;  %v2469_v8 = vld [vmem:[%s2908_s8] sm:$0xff]  }
 0x3f0   : > { %v1204_v10 = vadd.f32 %v1199_v9, %v1088_v4  ;;  %v2292_v11 = vpop.f32.mrb[23].mxu0 }
 0x3f1   : > { %v2470_v11 = vld [vmem:[%s2908_s8 + $0x8] sm:$0xff]  }
 0x3fd   : > { %v1250_v12 = vpop.f32.mrb[24].mxu0 }
 0x3fe   : > { %v2303_v13 = vpop.f32.mrb[25].mxu0 }
 0x3ff   : > { %v1253_v14 = vpop.f32.mrb[26].mxu0  ;;  %v2472_v13 = vld [vmem:[%s2908_s8 + $0x18] sm:$0xff]  }
 0x400   : > { %v1257_v15 = vpack.c.bf16 %v1253_v14, %v1250_v12  ;;  %v2304_v16 = vpop.f32.mrb[27].mxu0  ;;  %v2471_v12 = vld [vmem:[%s2908_s8 + $0x10] sm:$0xff]  }
 0x402   : > { %2310 = vmatmul.mubr.msk.bf16.vlgmr.msra.gmra.mrb[32].mxu1 %vm661_vm2, %v1257_v15  ;;  %v2106_v15 = vld [vmem:[%s2905_s5] ss:$0 sm:$0xff] }
 0x403   : > { %2314 = vmatpush3.bf16.msra.mxu1 %v2623_v33  ;;  %2321 = vmatprep.mubr.msk.bf16.mxu1 %vm2483_vm1, %v2482_v23 }
 0x404   : > { %2315 = vmatprep.subr.bf16.mxu1 %v2482_v23 }
 0x407   : > { %2316 = vmatpush3.bf16.msra.mxu1 %v2627_v42 }
 0x408   : > { %2317 = vmatprep.subr.bf16.mxu1 %v2482_v23 }
 0x40b   : > { %2318 = vmatpush3.bf16.msra.mxu1 %v2634_v51 }
 0x40c   : > { %2319 = vmatprep.subr.bf16.mxu1 %v2482_v23 }
 0x40f   : > { %2320 = vmatpush3.bf16.msra.mxu1 %v2641_v60 }
 0x410   : > { %2345 = vmatprep.subr.bf16.mxu1 %v2482_v23 }
 0x412   : > { %2322 = vmatmul.mubr.msk.bf16.vlgmr.msra.gmra.mrb[36].mxu1 %vm548_vm0, %v2457_v17 }
 0x413   : > { %2349 = vmatprep.mubr.msk.bf16.mxu1 %vm2483_vm1, %v2482_v23  ;;  %2346 = vmatpush3.bf16.msra.mxu1 %v2461_v34 }
 0x414   : > { %2347 = vmatprep.subr.bf16.mxu1 %v2482_v23 }
 0x417   : > { %2348 = vmatpush3.bf16.msra.mxu1 %v2462_v35 }
 0x418   : > { %2353 = vmatprep.subr.bf16.mxu1 %v2482_v23 }
 0x4d5   : > { %v1312_v20 = vpop.f32.mrb[32].mxu1 }
 0x4d6   : > { %v1319_v21 = vadd.f32 %v1312_v20, %v1203_v7  ;;  %v2311_v22 = vpop.f32.mrb[33].mxu1 }
 0x4d7   : > { %v1315_v24 = vpop.f32.mrb[34].mxu1 }
 0x4d8   : > { %v1320_v25 = vadd.f32 %v1315_v24, %v1204_v10  ;;  %v2312_v26 = vpop.f32.mrb[35].mxu1 }
 0x4d9   : > { %v2107_v26 = vld [vmem:[%s2909_s9] ss:$0 sm:$0xff] }
 0x4e5   : > { %v1366_v27 = vpop.f32.mrb[36].mxu1 }
 0x4e6   : > { %v2323_v28 = vpop.f32.mrb[37].mxu1 }
 0x4e7   : > { %v1369_v29 = vpop.f32.mrb[38].mxu1 }
 0x4e8   : > { %v1373_v30 = vpack.c.bf16 %v1369_v29, %v1366_v27  ;;  %v2324_v31 = vpop.f32.mrb[39].mxu1 }
 0x4ea   : > { %2330 = vmatmul.mubr.msk.bf16.vlgmr.msra.gmra.mrb[28].mxu0 %vm661_vm2, %v1373_v30 }
 0x4eb   : > { %2334 = vmatpush3.bf16.msra.mxu0 %v2623_v33  ;;  %2341 = vmatprep.mubr.msk.bf16.mxu0 %vm2483_vm1, %v2482_v23 }
 0x4ec   : > { %2335 = vmatprep.subr.bf16.mxu0 %v2482_v23 }
 0x4ef   : > { %2336 = vmatpush3.bf16.msra.mxu0 %v2627_v42 }
 0x4f0   : > { %2337 = vmatprep.subr.bf16.mxu0 %v2482_v23 }
 0x4f3   : > { %2338 = vmatpush3.bf16.msra.mxu0 %v2634_v51 }
 0x4f4   : > { %2339 = vmatprep.subr.bf16.mxu0 %v2482_v23 }
 0x4f7   : > { %2340 = vmatpush3.bf16.msra.mxu0 %v2641_v60 }
 0x4f8   : > { %2365 = vmatprep.subr.bf16.mxu0 %v2482_v23 }
 0x4fa   : > { %2342 = vmatmul.mubr.msk.bf16.vlgmr.msra.gmra.mrb[32].mxu0 %vm548_vm0, %v2460_v32 }
 0x4fb   : > { %2369 = vmatprep.mubr.msk.bf16.mxu0 %vm2483_vm1, %v2482_v23  ;;  %2366 = vmatpush3.bf16.msra.mxu0 %v2464_v49 }
 0x4fc   : > { %2367 = vmatprep.subr.bf16.mxu0 %v2482_v23 }
 0x4ff   : > { %2368 = vmatpush3.bf16.msra.mxu0 %v2465_v50 }
 0x500   : > { %2373 = vmatprep.subr.bf16.mxu0 %v2482_v23 }
 0x5bd   : > { %v1428_v36 = vpop.f32.mrb[28].mxu0 }
 0x5be   : > { %v1435_v37 = vadd.f32 %v1428_v36, %v1319_v21  ;;  %v2331_v38 = vpop.f32.mrb[29].mxu0 }
 0x5bf   : > { %v1431_v39 = vpop.f32.mrb[30].mxu0 }
 0x5c0   : > { %v1436_v40 = vadd.f32 %v1431_v39, %v1320_v25  ;;  %v2332_v41 = vpop.f32.mrb[31].mxu0 }
 0x5cd   : > { %v1482_v43 = vpop.f32.mrb[32].mxu0 }
 0x5ce   : > { %v2343_v44 = vpop.f32.mrb[33].mxu0 }
 0x5cf   : > { %v1485_v45 = vpop.f32.mrb[34].mxu0 }
 0x5d0   : > { %v1489_v46 = vpack.c.bf16 %v1485_v45, %v1482_v43  ;;  %v2344_v47 = vpop.f32.mrb[35].mxu0 }
 0x5d2   : > { %2350 = vmatmul.mubr.msk.bf16.vlgmr.msra.gmra.mrb[40].mxu1 %vm661_vm2, %v1489_v46 }
 0x5d3   : > { %2354 = vmatpush3.bf16.msra.mxu1 %v2623_v33  ;;  %2361 = vmatprep.mubr.msk.bf16.mxu1 %vm2483_vm1, %v2482_v23 }
 0x5d4   : > { %2355 = vmatprep.subr.bf16.mxu1 %v2482_v23 }
 0x5d7   : > { %2356 = vmatpush3.bf16.msra.mxu1 %v2627_v42 }
 0x5d8   : > { %2357 = vmatprep.subr.bf16.mxu1 %v2482_v23 }
 0x5db   : > { %2358 = vmatpush3.bf16.msra.mxu1 %v2634_v51 }
 0x5dc   : > { %2359 = vmatprep.subr.bf16.mxu1 %v2482_v23 }
 0x5df   : > { %2360 = vmatpush3.bf16.msra.mxu1 %v2641_v60 }
 0x5e0   : > { %2385 = vmatprep.subr.bf16.mxu1 %v2482_v23 }
 0x5e2   : > { %2362 = vmatmul.mubr.msk.bf16.vlgmr.msra.gmra.mrb[44].mxu1 %vm548_vm0, %v2463_v48 }
 0x5e3   : > { %2389 = vmatprep.mubr.msk.bf16.mxu1 %vm2483_vm1, %v2482_v23 }
 0x6a5   : > { %v1544_v52 = vpop.f32.mrb[40].mxu1 }
 0x6a6   : > { %v1551_v53 = vadd.f32 %v1544_v52, %v1435_v37  ;;  %v2351_v54 = vpop.f32.mrb[41].mxu1 }
 0x6a7   : > { %v1547_v55 = vpop.f32.mrb[42].mxu1 }
 0x6a8   : > { %v1552_v56 = vadd.f32 %v1547_v55, %v1436_v40  ;;  %v2352_v57 = vpop.f32.mrb[43].mxu1 }
 0x6b5   : > { %v1598_v58 = vpop.f32.mrb[44].mxu1 }
 0x6b6   : > { %v2363_v59 = vpop.f32.mrb[45].mxu1 }
 0x6b7   : > { %v1601_v61 = vpop.f32.mrb[46].mxu1 }
 0x6b8   : > { %v1605_v62 = vpack.c.bf16 %v1601_v61, %v1598_v58  ;;  %v2364_v63 = vpop.f32.mrb[47].mxu1 }
 0x6ba   : > { %2370 = vmatmul.mubr.msk.bf16.vlgmr.msra.gmra.mrb[36].mxu0 %vm661_vm2, %v1605_v62 }
 0x6bb   : > { %2374 = vmatpush3.bf16.msra.mxu0 %v2623_v33  ;;  %2381 = vmatprep.mubr.msk.bf16.mxu0 %vm2483_vm1, %v2482_v23  ;;  %v2467_v33 = vld [vmem:[%s2904_s4 + $0x80] sm:$0xff]  }
 0x6bc   : > { %2375 = vmatprep.subr.bf16.mxu0 %v2482_v23  ;;  %2386 = vmatpush3.bf16.msra.mxu1 %v2467_v33 }
 0x6bd   : > { %2387 = vmatprep.subr.bf16.mxu1 %v2482_v23 }
 0x6bf   : > { %2376 = vmatpush3.bf16.msra.mxu0 %v2627_v42  ;;  %v2468_v42 = vld [vmem:[%s2904_s4 + $0x88] sm:$0xff]  }
 0x6c0   : > { %2377 = vmatprep.subr.bf16.mxu0 %v2482_v23  ;;  %2388 = vmatpush3.bf16.msra.mxu1 %v2468_v42 }
 0x6c1   : > { %2393 = vmatprep.subr.bf16.mxu1 %v2482_v23 }
 0x6c3   : > { %2378 = vmatpush3.bf16.msra.mxu0 %v2634_v51 }
 0x6c4   : > { %2379 = vmatprep.subr.bf16.mxu0 %v2482_v23 }
 0x6c7   : > { %2380 = vmatpush3.bf16.msra.mxu0 %v2641_v60 }
 0x6ca   : > { %2382 = vmatmul.mubr.msk.bf16.vlgmr.msra.gmra.mrb[40].mxu0 %vm548_vm0, %v2466_v0 }
 0x78d   : > { %v1660_v51 = vpop.f32.mrb[36].mxu0 }
 0x78e   : > { %v1667_v1 = vadd.f32 %v1660_v51, %v1551_v53  ;;  %v2371_v2 = vpop.f32.mrb[37].mxu0 }
 0x78f   : > { %v1663_v60 = vpop.f32.mrb[38].mxu0 }
 0x790   : > { %v1668_v3 = vadd.f32 %v1663_v60, %v1552_v56  ;;  %v2372_v4 = vpop.f32.mrb[39].mxu0 }
 0x79d   : > { %v1714_v5 = vpop.f32.mrb[40].mxu0 }
 0x79e   : > { %v2383_v6 = vpop.f32.mrb[41].mxu0 }
 0x79f   : > { %v1717_v7 = vpop.f32.mrb[42].mxu0 }
 0x7a0   : > { %v1721_v9 = vpack.c.bf16 %v1717_v7, %v1714_v5  ;;  %v2384_v10 = vpop.f32.mrb[43].mxu0 }
 0x7a2   : > { %2390 = vmatmul.mubr.msk.bf16.vlgmr.msra.gmra.mrb[48].mxu1 %vm661_vm2, %v1721_v9 }
 0x7a3   : > { %2394 = vmatpush3.bf16.msra.mxu1 %v2469_v8  ;;  %2401 = vmatprep.mubr.msk.bf16.mxu1 %vm2483_vm1, %v2482_v23 }
 0x7a4   : > { %2395 = vmatprep.subr.bf16.mxu1 %v2482_v23 }
 0x7a7   : > { %2396 = vmatpush3.bf16.msra.mxu1 %v2470_v11 }
 0x7a8   : > { %2397 = vmatprep.subr.bf16.mxu1 %v2482_v23 }
 0x7ab   : > { %2398 = vmatpush3.bf16.msra.mxu1 %v2471_v12 }
 0x7ac   : > { %2399 = vmatprep.subr.bf16.mxu1 %v2482_v23 }
 0x7af   : > { %2400 = vmatpush3.bf16.msra.mxu1 %v2472_v13 }
 0x875   : > { %v1776_v14 = vpop.f32.mrb[48].mxu1 }
 0x876   : > { %v1783_v16 = vadd.f32 %v1776_v14, %v1667_v1  ;;  %v2391_v17 = vpop.f32.mrb[49].mxu1 }
 0x877   : > { %v1779_v18 = vpop.f32.mrb[50].mxu1 }
 0x878   : > { %v1792_v19 = vadd.f32 %v2106_v15, %v1783_v16  ;;  %v1784_v20 = vadd.f32 %v1779_v18, %v1668_v3  ;;  %v2392_v21 = vpop.f32.mrb[51].mxu1 }
 0x87a   : > { %v1793_v22 = vadd.f32 %v2106_v15, %v1784_v20  ;;  %v1794_v24 = vmax.f32 %v1792_v19, 0.0 }
 0x87c   : > { %v1795_v23 = vmax.f32 %v1793_v22, 0.0 }
 0x87e   : > { %v1796_v25 = vpack.c.bf16 %v1795_v23, %v1794_v24 }
 0x880   : > { %2402 = vmatmul.mubr.msk.bf16.vlgmr.msra.gmra.mrb[52].mxu1 %vm548_vm0, %v1796_v25 }
 0x953   : > { %v1873_v27 = vpop.f32.mrb[52].mxu1 }
 0x954   : > { %v1874_v28 = vadd.f32 %v2107_v26, %v1873_v27  ;;  %v2403_v29 = vpop.f32.mrb[53].mxu1 }
 0x955   : > { %v1876_v30 = vpop.f32.mrb[54].mxu1 }
 0x956   : > { %1880 = vst [vmem:[%s399_s27] sm:$0xff] %v1874_v28  ;;  %v1877_v31 = vadd.f32 %v2107_v26, %v1876_v30  ;;  %v2404_v32 = vpop.f32.mrb[55].mxu1 }
 0x958   : > { %1881 = vst [vmem:[%s399_s27 + $0x8] sm:$0xff] %v1877_v31 }
 0x959 PF: > { %s22_s17 = sadd.s32 1, %s2479_s17  }
 0x95a   : > { %p19_p4 = scmp.ge.s32.totalorder %s22_s17, 4  }
 0x95c   :  { %21 = sbr.rel (!%p19_p4) target bundleno = 1 (0x1), region = 118 }

</bundles_post_ra>
